<compile_context>
chip_gen: v7x
topology: tpu7x:2x2x1
jax: 0.10.0
libtpu: 0.0.40
codegen_flags: <defaults>
</compile_context>

<pallas_src>
import math
import jax
import jax.numpy as jnp
from jax.experimental import pallas as pl
from jax.experimental.pallas import tpu as pltpu

_LANES = 128
_MAX_BLOCK_BYTES = 2 << 20          # 2 MiB per block per operand

_INV_SQRT2 = 1.0 / math.sqrt(2.0)

# Abramowitz & Stegun 7.1.26 erf coefficients (max abs error ~1.5e-7).
_ERF_P = 0.3275911
_ERF_A1 = 0.254829592
_ERF_A2 = -0.284496736
_ERF_A3 = 1.421413741
_ERF_A4 = -1.453152027
_ERF_A5 = 1.061405429


def _gelu_kernel(x_ref, o_ref):
    x = x_ref[...].astype(jnp.float32)
    # gelu(x) = 0.5*x*(1 + erf(x/sqrt2)) = 0.5*(x + |x|*erf(|x|/sqrt2)),
    # since erf is odd -> no sign select / negation needed.
    ax = jnp.abs(x)
    a = ax * _INV_SQRT2
    d = 1.0 + _ERF_P * a
    t = pl.reciprocal(d, approx=True)        # EUP slot instead of VALU divide
    t = t * (2.0 - d * t)                    # one Newton step -> ~f32-exact 1/d
    poly = t * (_ERF_A1 + t * (_ERF_A2 + t * (_ERF_A3 + t * (_ERF_A4 + t * _ERF_A5))))
    erf_a = 1.0 - poly * jnp.exp(-a * a)     # erf(|x|/sqrt2) >= 0
    y = 0.5 * (x + ax * erf_a)
    o_ref[...] = y.astype(o_ref.dtype)


def _sublane_tile(dtype):
    itemsize = jnp.dtype(dtype).itemsize
    return max(8, 32 // itemsize)            # f32: 8, bf16: 16, int8/fp8: 32


def gelu(x, max_block_bytes=_MAX_BLOCK_BYTES):
    """Exact (erf) GELU, shape-preserving, any-rank input."""
    shape, dtype = x.shape, x.dtype
    n = x.size
    if n == 0:
        return x

    itemsize = jnp.dtype(dtype).itemsize
    sublane = _sublane_tile(dtype)

    rows = -(-n // _LANES)                   # ceil(n / 128)
    n_pad = rows * _LANES

    flat = jnp.ravel(x)
    if n_pad != n:                           # pad only the sub-128 remainder
        flat = jnp.pad(flat, (0, n_pad - n))
    x2d = flat.reshape(rows, _LANES)         # lane-dense layout

    if rows <= sublane:
        block_rows = rows                    # full-extent block: always legal
    else:
        # VMEM-budgeted cap (multiple of the native sublane tile) ...
        cap = max(sublane, (max_block_bytes // (_LANES * itemsize)) // sublane * sublane)
        # ... and guarantee >=2 grid steps so both v7x TensorCores get work.
        half = max(sublane, (rows // 2) // sublane * sublane)
        block_rows = min(cap, half)
    grid = (-(-rows // block_rows),)         # cdiv; trailing partial block is masked

    cost = pl.CostEstimate(
        flops=20 * n,
        transcendentals=2 * n,
        bytes_accessed=2 * n * itemsize,
    )

    out2d = pl.pallas_call(
        _gelu_kernel,
        out_shape=jax.ShapeDtypeStruct((rows, _LANES), dtype),
        grid=grid,
        in_specs=[pl.BlockSpec((block_rows, _LANES), lambda i: (i, 0))],
        out_specs=pl.BlockSpec((block_rows, _LANES), lambda i: (i, 0)),
        compiler_params=pltpu.CompilerParams(
            dimension_semantics=("parallel",)),
        cost_estimate=cost,
    )(x2d)

    out = out2d.reshape(-1)
    if n_pad != n:
        out = out[:n]
    return out.reshape(shape)


if __name__ == "__main__":
    key = jax.random.PRNGKey(0)
    # small shape consistent with an activation module input: (B, C, H, W)
    x = jax.random.normal(key, (2, 4, 16, 16), jnp.float32)

    out = jax.block_until_ready(gelu(x))

    # exact-erf GELU reference (matches F.gelu default / the _gelu_python branch)
    ref = jax.block_until_ready(jax.nn.gelu(x, approximate=False))
    assert out.shape == x.shape
    max_err = float(jnp.max(jnp.abs(out - ref)))
    assert jnp.allclose(out, ref, atol=1e-5, rtol=1e-5), max_err
    print("KERNEL_OK")
</pallas_src>

<mosaic_0001>
module attributes {stable_mosaic.version = 11 : i64} {
  func.func @_gelu_kernel(%arg0: i32, %arg1: memref<8x128xf32, #tpu.memory_space<vmem>>, %arg2: memref<8x128xf32, #tpu.memory_space<vmem>>) attributes {dimension_semantics = [#tpu.dimension_semantics<parallel>], iteration_bounds = array<i64: 2>, scalar_prefetch = 0 : i64, scratch_operands = 0 : i64, tpu.core_type = #tpu.core_type<tc>, window_params = [{transform_indices = @transform_0, window_bounds = array<i64: 8, 128>}, {transform_indices = @transform_1, window_bounds = array<i64: 8, 128>}]} {
    %c0 = arith.constant 0 : index
    %c0_0 = arith.constant 0 : index
    %0 = vector.load %arg1[%c0, %c0_0] : memref<8x128xf32, #tpu.memory_space<vmem>>, vector<8x128xf32>
    %1 = math.absf %0 : vector<8x128xf32>
    %cst = arith.constant 0.707106769 : f32
    %2 = vector.broadcast %cst : f32 to vector<8x128xf32>
    %3 = arith.mulf %1, %2 : vector<8x128xf32>
    %cst_1 = arith.constant 0.327591091 : f32
    %4 = vector.broadcast %cst_1 : f32 to vector<8x128xf32>
    %5 = arith.mulf %4, %3 : vector<8x128xf32>
    %cst_2 = arith.constant 1.000000e+00 : f32
    %6 = vector.broadcast %cst_2 : f32 to vector<8x128xf32>
    %7 = arith.addf %6, %5 : vector<8x128xf32>
    %8 = tpu.reciprocal %7 {approx = true} : vector<8x128xf32> -> vector<8x128xf32>
    %9 = arith.mulf %7, %8 : vector<8x128xf32>
    %cst_3 = arith.constant 2.000000e+00 : f32
    %10 = vector.broadcast %cst_3 : f32 to vector<8x128xf32>
    %11 = arith.subf %10, %9 : vector<8x128xf32>
    %12 = arith.mulf %8, %11 : vector<8x128xf32>
    %cst_4 = arith.constant 1.06140542 : f32
    %13 = vector.broadcast %cst_4 : f32 to vector<8x128xf32>
    %14 = arith.mulf %12, %13 : vector<8x128xf32>
    %cst_5 = arith.constant -1.45315206 : f32
    %15 = vector.broadcast %cst_5 : f32 to vector<8x128xf32>
    %16 = arith.addf %15, %14 : vector<8x128xf32>
    %17 = arith.mulf %12, %16 : vector<8x128xf32>
    %cst_6 = arith.constant 1.42141378 : f32
    %18 = vector.broadcast %cst_6 : f32 to vector<8x128xf32>
    %19 = arith.addf %18, %17 : vector<8x128xf32>
    %20 = arith.mulf %12, %19 : vector<8x128xf32>
    %cst_7 = arith.constant -0.284496725 : f32
    %21 = vector.broadcast %cst_7 : f32 to vector<8x128xf32>
    %22 = arith.addf %21, %20 : vector<8x128xf32>
    %23 = arith.mulf %12, %22 : vector<8x128xf32>
    %cst_8 = arith.constant 0.254829586 : f32
    %24 = vector.broadcast %cst_8 : f32 to vector<8x128xf32>
    %25 = arith.addf %24, %23 : vector<8x128xf32>
    %26 = arith.mulf %12, %25 : vector<8x128xf32>
    %cst_9 = arith.constant 0.000000e+00 : f32
    %27 = vector.broadcast %cst_9 : f32 to vector<8x128xf32>
    %28 = arith.subf %27, %3 : vector<8x128xf32>
    %29 = arith.mulf %28, %3 : vector<8x128xf32>
    %30 = math.exp %29 : vector<8x128xf32>
    %31 = arith.mulf %26, %30 : vector<8x128xf32>
    %cst_10 = arith.constant 1.000000e+00 : f32
    %32 = vector.broadcast %cst_10 : f32 to vector<8x128xf32>
    %33 = arith.subf %32, %31 : vector<8x128xf32>
    %34 = arith.mulf %1, %33 : vector<8x128xf32>
    %35 = arith.addf %0, %34 : vector<8x128xf32>
    %cst_11 = arith.constant 5.000000e-01 : f32
    %36 = vector.broadcast %cst_11 : f32 to vector<8x128xf32>
    %37 = arith.mulf %36, %35 : vector<8x128xf32>
    %c0_12 = arith.constant 0 : index
    %c0_13 = arith.constant 0 : index
    %38 = vector.load %arg2[%c0_12, %c0_13] : memref<8x128xf32, #tpu.memory_space<vmem>>, vector<8x128xf32>
    tpu.vector_store %arg2[%c0_12, %c0_13], %37 {strides = array<i32>} : memref<8x128xf32, #tpu.memory_space<vmem>>, vector<8x128xf32>,
    return
  }
  func.func @transform_0(%arg0: i32) -> (i32, i32) {
    %c0_i32 = arith.constant 0 : i32
    %c0_i32_0 = arith.constant 0 : i32
    return %arg0, %c0_i32 : i32, i32
  }
  func.func @transform_1(%arg0: i32) -> (i32, i32) {
    %c0_i32 = arith.constant 0 : i32
    %c0_i32_0 = arith.constant 0 : i32
    return %arg0, %c0_i32 : i32, i32
  }
}

</mosaic_0001>

<bundles_post_ra>
// kernel: tpu_custom_call.1
= control target key start
LH: loop header
LB: loop body
LE: loop exit
PB: predicated region body
PF: predicated region fallthrough
CT: control target
= control target key end

     0   :  { %6 = vsyncpa [#allocation3], 0  ;;  %s581_s0 = inlined_call_operand.hbm [shape: f32[16,128], index: 0, kind: input, shape index: {}]   ;;  %s582_s1 = inlined_call_operand.hbm [shape: f32[16,128], index: 1, kind: output, shape index: {}]  }
   0x1   :  { %8 = vsyncpa [#allocation3 + $0x1], 0 }
   0x2   :  { %9 = vsyncpa [#allocation4], 0 }
   0x3   :  { %11 = vsyncpa [#allocation4 + $0x1], 0  ;;  %s416_s6 = smov 0   ;;  %s418_s7 = smov 0  }
   0x4   :  { %s420_s8 = smov 0   ;;  %s422_s9 = smov 0  }
   0x5 LB: > { %s437_s10 = sadd.s32 4294967295, %s402_s9   ;;  %s244_s11 = sadd.s32 4294967294, %s402_s9   ;;  %s402_s9 = sphi %s422_s9, %s597_s9   ;;  %s398_s8 = sphi %s420_s8, %s596_s8   ;;  %s394_s7 = sphi %s418_s7, %s595_s7   ;;  %s390_s6 = sphi %s416_s6, %s594_s6  }
   0x6   : > { %s441_s12 = sadd.s32 1, %s402_s9   ;;  %s24_s13 = sadd.s32 1, %s398_s8 }
   0x7   : > { %s21_s14 = ssub.s32 %s402_s9, %s441_s12  ;;  %p31_p0 = scmp.ne.s32.totalorder %s398_s8, %s394_s7 }
   0x8   : > { %p22_p1 = scmp.eq.s32.totalorder %s21_s14, 0  ;;  %p32_p2 = scmp.eq.s32.totalorder %s402_s9, 0 }
   0x9   : > { %p37_p3 = scmp.ne.s32.totalorder %s394_s7, %s390_s6  ;;  %p38_p4 = scmp.eq.s32.totalorder %s437_s10, 0 }
   0xa   : > { %s453_s15 = scalar_select %p22_p1, %s398_s8, %s24_s13  }
   0xb   : > { %p455_p5 = por %p32_p2, %p31_p0  ;;  %p459_p6 = por %p38_p4, %p37_p3 }
   0xc   : > { %p61_p7 = scmp.eq.s32.totalorder %s437_s10, 1  ;;  %p67_p8 = scmp.eq.s32.totalorder %s244_s11, 1 }
   0xd   : > { %p268_p10 = scmp.lt.s32.totalorder %s402_s9, 2  ;;  %s87_s20 = sand.u32 1, %s398_s8  }
   0xe   : > { %p466_p11 = por %p61_p7, %p31_p0  ;;  %p470_p12 = por %p67_p8, %p37_p3 }
   0xf   : > { %s248_s21 = sshll.u32 %s402_s9, 7  ;;  %s247_s22 = sshll.u32 %s87_s20, 3 }
  0x10   : > { %s586_s18 = scalar_select %p466_p11, 1, 0 }
  0x11   : > { %s587_s19 = scalar_select %p470_p12, 1, 0 }
  0x12   : > { %s479_s25 = scalar_lea.hbm %s581_s0, %s248_s21  ;;  %s91_s26 = scalar_lea.vmem [#allocation2], %s247_s22 }
  0x13   : > { %s98_s27 = sshll.u32 %s91_s26, 4  ;;  %p483_p13 = pnand %p268_p10, %p455_p5  ;;  %s487_s27 = int_to_ptr.vmem [resolvable:$true] %s98_s27 }
  0x14   : > { %s88_s29 = scalar_lea.sflag [#allocation3], %s87_s20  ;;  %s306_s30 = scalar_lea.hbm %s479_s25, 128 }
  0x15   : > { %p307_p2 = scmp.ne.s32.totalorder %s479_s25, %s306_s30  ;;  %p308_p3 = pneg %p483_p13 }
  0x16   : > { %s311_s4 = scalar_lea.hbm %s581_s0, 256  ;;  %p312_p5 = scmp.lt.u32.totalorder %s479_s25, %s581_s0 }
  0x17   : > { %p309_p4 = pnand %p308_p3, %p307_p2  ;;  %p313_p8 = scmp.lt.u32.totalorder %s311_s4, %s306_s30 }
  0x18   : > { %p315_p9 = scmp.lt.u32.totalorder %s306_s30, %s479_s25 }
  0x19   : > { %p310_p7 = pneg %p309_p4  ;;  %p314_p10 = por %p313_p8, %p312_p5 }
  0x1b   : > { %p316_p0 = por %p315_p9, %p314_p10 }
  0x1d   : > { %p317_p1 = pnand %p316_p0, %p310_p7 }
  0x1f   : > { %320 = shalt.err (!%p317_p1)
}
  0x20   : > { %s321_s13 = scalar_lea.vmem %s487_s27, 128  ;;  %s404_s14 = smov [#allocation2]  }
  0x21   : > { %p322_p2 = scmp.ne.s32.totalorder %s487_s27, %s321_s13  ;;  %s326_s16 = sshll.u32 %s404_s14, 4  ;;  %s327_s16 = int_to_ptr.vmem [resolvable:$false] %s326_s16 }
  0x22   : > { %s328_s20 = scalar_lea.vmem %s327_s16, 256  ;;  %p329_p11 = scmp.lt.s32.totalorder %s487_s27, %s327_s16 }
  0x23   : > { %p324_p4 = pnand %p322_p2, %p308_p3  ;;  %p330_p5 = scmp.lt.s32.totalorder %s328_s20, %s321_s13 }
  0x25   : > { %p325_p12 = pneg %p324_p4  ;;  %p331_p8 = por %p330_p5, %p329_p11 }
  0x27   : > { %p332_p9 = pnand %p331_p8, %p325_p12 }
  0x29   : > { %335 = shalt.err (!%p332_p9)
}
  0x2a   : > { %263 = dma.hbm_to_vmem [thread:$0]  (!%p483_p13), %s479_s25, 128, %s487_s27, %s88_s29  }
  0x2b   : > { %p589_p0 = scmp.lt.s32.totalorder %s402_s9, 3  ;;  %p590_p1 = scmp.ge.s32.totalorder %s402_s9, 1 }
  0x2d   : > { %p104_p3 = pnand %p590_p1, %p589_p0 }
  0x2e   : > { %s521_s21 = sand.u32 (!%p104_p3), 1, %s394_s7  }
  0x2f   : > { %107 = sbr.rel (%p104_p3) target bundleno = 123 (0x7b), region = 24  ;;  %s250_s22 = sshll.u32 (!%p104_p3), %s521_s21, 3 }
  0x30   : > { %s110_s23 = scalar_lea.sflag (!%p104_p3), [#allocation3], %s521_s21  ;;  %s113_s24 = scalar_lea.vmem (!%p104_p3), [#allocation2], %s250_s22 }
  0x36   : > { %381 = dma.done.wait (%p459_p6), %s110_s23, 128  }
  0x37   : > { %383 = vsyncadd (%p459_p6), %s110_s23, 4294967168  ;;  %v132_v0 = vld [vmem:[%s113_s24] sm:$0xff]  ;;  %s131_s17 = scalar_lea.vmem [#allocation5], %s250_s22  ;;  %s253_s26 = sshll.u32 %s437_s10, 7 }
  0x38   : > { %v133_v1 = vand.u32 2147483647, %v132_v0  ;;  %s174_s25 = sshll.u32 %s131_s17, 4  ;;  %s539_s29 = scalar_lea.hbm %s582_s1, %s253_s26  ;;  %s534_s25 = int_to_ptr.vmem [resolvable:$true] %s174_s25 }
  0x39   : > { %s161_s30 = scalar_lea.sflag [#allocation4], %s521_s21  ;;  %s336_s2 = scalar_lea.vmem %s534_s25, 128 }
  0x3a   : > { %v134_v2 = vmul.f32 0.70710677, %v133_v1  ;;  %p337_p6 = scmp.ne.s32.totalorder %s534_s25, %s336_s2  ;;  %p591_p11 = scmp.ne.s32.totalorder %s586_s18, 0 }
  0x3b   : > { %s405_s10 = smov [#allocation5]  }
  0x3c   : > { %v135_v3 = vmul.f32 0.3275911, %v134_v2  ;;  %v150_v6 = vsub.f32 0.0, %v134_v2  ;;  %p338_p12 = pnand %p337_p6, %p591_p11  ;;  %s340_s3 = sshll.u32 %s405_s10, 4  ;;  %s341_s3 = int_to_ptr.vmem [resolvable:$false] %s340_s3 }
  0x3d   : > { %s342_s4 = scalar_lea.vmem %s341_s3, 256  ;;  %p343_p7 = scmp.lt.s32.totalorder %s534_s25, %s341_s3 }
  0x3e   : > { %v136_v4 = vadd.f32 1.0, %v135_v3  ;;  %v151_v9 = vmul.f32 %v150_v6, %v134_v2  ;;  %p339_p13 = pneg %p338_p12  ;;  %p344_p10 = scmp.lt.s32.totalorder %s342_s4, %s336_s2 }
  0x40   : > { %302 = vrcp.f32 %v136_v4  ;;  %v152_v12 = vmul.f32 1.442695, %v151_v9  ;;  %p345_p2 = por %p344_p10, %p343_p7 }
  0x42   : > { %304 = vpow2.f32 %v152_v12  ;;  %p346_p4 = pnand %p345_p2, %p339_p13 }
  0x4a   : > { %v303_v5 = vpop.eup %302 }
  0x4b   : > { %v138_v7 = vmul.f32 %v303_v5, %v136_v4 }
  0x4c   : > { %v305_v20 = vpop.eup %304 }
  0x4d   : > { %v139_v8 = vsub.f32 2.0, %v138_v7 }
  0x4f   : > { %v140_v10 = vmul.f32 %v303_v5, %v139_v8 }
  0x51   : > { %v141_v11 = vmul.f32 1.0614054, %v140_v10 }
  0x53   : > { %v142_v13 = vadd.f32 -1.4531521, %v141_v11 }
  0x55   : > { %v143_v14 = vmul.f32 %v142_v13, %v140_v10 }
  0x57   : > { %v144_v15 = vadd.f32 1.4214138, %v143_v14 }
  0x59   : > { %v145_v16 = vmul.f32 %v144_v15, %v140_v10 }
  0x5b   : > { %v146_v17 = vadd.f32 -0.28449672, %v145_v16 }
  0x5d   : > { %v147_v18 = vmul.f32 %v146_v17, %v140_v10 }
  0x5f   : > { %v148_v19 = vadd.f32 0.2548296, %v147_v18 }
  0x61   : > { %v149_v21 = vmul.f32 %v148_v19, %v140_v10 }
  0x63   : > { %v154_v22 = vmul.f32 %v305_v20, %v149_v21 }
  0x65   : > { %v155_v23 = vsub.f32 1.0, %v154_v22 }
  0x67   : > { %v156_v24 = vmul.f32 %v155_v23, %v133_v1 }
  0x69   : > { %v157_v25 = vadd.f32 %v156_v24, %v132_v0 }
  0x6b   : > { %v158_v26 = vmul.f32 0.5, %v157_v25 }
  0x6d   : > { %159 = vst [vmem:[%s131_s17] sm:$0xff] %v158_v26 }
  0x6e   : > { %349 = shalt.err (!%p346_p4)
}
  0x6f   : > { %s350_s5 = scalar_lea.hbm %s539_s29, 128  ;;  %s354_s14 = scalar_lea.hbm %s582_s1, 256 }
  0x70   : > { %p351_p5 = scmp.ne.s32.totalorder %s539_s29, %s350_s5  ;;  %p355_p0 = scmp.lt.u32.totalorder %s539_s29, %s582_s1 }
  0x71   : > { %p356_p1 = scmp.lt.u32.totalorder %s354_s14, %s350_s5  ;;  %p358_p6 = scmp.lt.u32.totalorder %s350_s5, %s539_s29 }
  0x72   : > { %p352_p8 = pnand %p351_p5, %p591_p11 }
  0x73   : > { %p357_p3 = por %p356_p1, %p355_p0 }
  0x74   : > { %p353_p9 = pneg %p352_p8 }
  0x75   : > { %p359_p12 = por %p358_p6, %p357_p3 }
  0x77   : > { %p360_p13 = pnand %p359_p12, %p353_p9 }
  0x79   : > { %363 = shalt.err (!%p360_p13)
}
  0x7a   : > { %258 = dma.vmem_to_hbm [thread:$0]  (%p591_p11), %s534_s25, 128, %s539_s29, %s161_s30  }
  0x7b PF: > { %s186_s21 = sand.u32 1, %s390_s6   ;;  %p592_p7 = scmp.ne.s32.totalorder %s587_s19, 0 }
  0x7c   : > { %p593_p10 = scmp.ge.s32.totalorder %s402_s9, 2  ;;  %s187_s22 = scalar_lea.sflag [#allocation4], %s186_s21 }
  0x7e   : > { %p265_p2 = pnand %p593_p10, %p592_p7 }
  0x80   : > { %385 = dma.done.wait (!%p265_p2), %s187_s22, 128  }
  0x81   : > { %387 = vsyncadd (!%p265_p2), %s187_s22, 4294967168  ;;  %p14_p4 = scmp.ge.s32.totalorder %s441_s12, 4   ;;  %s594_s6 = smov %s394_s7 }
  0x82   : > { %s595_s7 = smov %s398_s8  ;;  %s596_s8 = smov %s453_s15 }
  0x83   : > { %s597_s9 = smov %s441_s12  ;;  %16 = sbr.rel (!%p14_p4) target bundleno = 5 (0x5), region = 69 }
  0x8a   :  { %192 = vsyncpa [#allocation3], 1 }
  0x8b   :  { %194 = vsyncpa [#allocation3 + $0x1], 1 }
  0x8c   :  { %195 = vsyncpa [#allocation4], 1 }
  0x8d   :  { %197 = vsyncpa [#allocation4 + $0x1], 1 }

</bundles_post_ra>
